<compile_context>
chip_gen: v7x
topology: tpu7x:2x2x1
jax: 0.10.0
libtpu: 0.0.40
codegen_flags: <defaults>
</compile_context>

<pallas_src>
import jax
import jax.numpy as jnp
from jax import lax
from jax.experimental import pallas as pl
from jax.experimental.pallas import tpu as pltpu


_TARGET_X_TILE_BYTES = 4 << 20  # ~4 MiB per x tile: DMA >> per-step overhead


def _round_up(x: int, m: int) -> int:
    return (x + m - 1) // m * m


def _tpu_vmem_bytes() -> int:
    """VMEM capacity of the local TPU; conservative 64 MiB fallback."""
    try:
        info = pltpu.get_tpu_info()
        return int(getattr(info, "vmem_capacity_bytes", 64 << 20))
    except Exception:
        return 64 << 20


def _pick_tile_d(dim, hint, prefer_split, num_graphs, out_itemsize, vmem_cap):
    """Feature-dim tile: 128-multiple divisor of dim (or dim itself)."""
    cands = [c for c in (2048, 1024, 512, 384, 256, 128)
             if c <= dim and dim % c == 0]
    if not cands:
        # dim < 128 or not 128-divisible: single full-width feature tile.
        return dim
    if hint is not None:
        cands = [c for c in cands if c <= hint] or [cands[-1]]
    elif prefer_split and dim >= 256:
        # v7x: guarantee >= 2 tiles on the 'parallel' d axis (2 TensorCores).
        split = [c for c in cands if c <= dim // 2]
        if split:
            cands = split
    # Large-num_graphs guard: out double-buffer + f32 accumulator must leave
    # room for the x double buffer.
    for c in cands:
        if num_graphs * c * (2 * out_itemsize + 4) <= vmem_cap // 2:
            return c
    return cands[-1]


def _choose_tiles(num_nodes, dim, num_graphs, itemsize, out_itemsize,
                  vmem_cap, prefer_split_d, tile_n_hint, tile_d_hint):
    # Sublane granule is dtype-aware: 8 rows (f32) / 16 (bf16) / 32 (int8/fp8).
    sub = max(8, 32 // itemsize)
    tile_d = _pick_tile_d(dim, tile_d_hint, prefer_split_d, num_graphs,
                          out_itemsize, vmem_cap)

    fixed = num_graphs * tile_d * (2 * out_itemsize + 4)   # out dbl-buf + acc
    x_budget = max(vmem_cap - fixed - (4 << 20), 2 * sub * tile_d * itemsize)
    max_tile_n = max(sub, (x_budget // (2 * tile_d * itemsize)) // sub * sub)

    if tile_n_hint is not None:
        tile_n = max(sub, _round_up(int(tile_n_hint), sub))
    else:
        tile_n = max(sub,
                     (_TARGET_X_TILE_BYTES // (tile_d * itemsize)) // sub * sub)
    tile_n = min(tile_n, max_tile_n)
    # Don't pad a small node set out to a huge tile.
    tile_n = min(tile_n, _round_up(max(num_nodes, 1), sub))
    return int(tile_n), int(tile_d)


def _make_sum_pool_kernel(num_graphs: int, tile_n: int):
    def kernel(gid_ref, x_ref, out_ref, acc_ref):
        ni = pl.program_id(1)  # node-tile axis (innermost reduction)

        @pl.when(ni == 0)
        def _init():
            acc_ref[...] = jnp.zeros_like(acc_ref)

        gids = gid_ref[0]                                   # (1, tile_n) int32
        graph_iota = lax.broadcasted_iota(jnp.int32, (num_graphs, tile_n), 0)
        # Transposed, lane-dense one-hot membership. 0/1 is exact in any float
        # dtype, so match x's dtype and let the MXU accumulate in f32.
        onehot = (gids == graph_iota).astype(x_ref.dtype)   # (num_graphs, tile_n)

        # (num_graphs, tile_n) @ (tile_n, tile_d) -> (num_graphs, tile_d)
        acc_ref[...] += lax.dot_general(
            onehot,
            x_ref[...],
            dimension_numbers=(((1,), (0,)), ((), ())),
            preferred_element_type=jnp.float32,
        )

        @pl.when(ni == pl.num_programs(1) - 1)
        def _finalize():
            out_ref[...] = acc_ref[...].astype(out_ref.dtype)

    return kernel


def graph_sum_pooling(x_e, graph_ids, entity_ids=None, *, num_graphs: int,
                      tile_n=None, tile_d=None):
    """Sum-pooling GraphPooling.forward.

    x_e:        (num_nodes, dim) float -- node representations
    graph_ids:  (num_nodes,)     int   -- graph id per node, in [0, num_graphs)
    entity_ids: (num_nodes,)     int   -- unused by sum aggregation
    returns:    (num_graphs, dim)
    """
    # TODO(synk): entity_ids is part of the abstract GraphPooling signature but
    # is not used by sum aggregation; it is accepted and ignored here.
    del entity_ids
    num_nodes, dim = x_e.shape
    if not jnp.issubdtype(x_e.dtype, jnp.floating):
        # v7x's MXU has no integer path; keep the contraction in float.
        x_e = x_e.astype(jnp.float32)
    graph_ids = graph_ids.astype(jnp.int32)

    itemsize = jnp.dtype(x_e.dtype).itemsize
    out_itemsize = itemsize

    # --- Generation-aware VMEM budget / parallel-axis policy. ---
    vmem_bytes = _tpu_vmem_bytes()
    small_vmem = vmem_bytes <= (64 << 20)     # v7x-class: 64 MiB VMEM, 2 TCs
    vmem_cap = (48 << 20) if small_vmem else min(96 << 20, (vmem_bytes * 3) // 4)
    prefer_split_d = small_vmem               # feed both v7x TensorCores

    tile_n, tile_d = _choose_tiles(num_nodes, dim, num_graphs, itemsize,
                                   out_itemsize, vmem_cap, prefer_split_d,
                                   tile_n, tile_d)

    # --- Node-axis padding with an out-of-range graph id (zero one-hot col).
    # NOTE: caller-provided ids equal to num_graphs are invalid (contract is
    # ids in [0, num_graphs)); such rows would be silently dropped.
    padded_nodes = _round_up(max(num_nodes, 1), tile_n)
    if padded_nodes != num_nodes:
        pad = padded_nodes - num_nodes
        x_e = jnp.pad(x_e, ((0, pad), (0, 0)))
        graph_ids = jnp.pad(graph_ids, (0, pad), constant_values=num_graphs)
    num_node_tiles = padded_nodes // tile_n
    # Per-node-tile graph-id blocks: (num_node_tiles, 1, tile_n) so the
    # BlockSpec streams a tiny (1, 1, tile_n) block each step instead of
    # keeping the whole table resident in VMEM.
    gid3d = graph_ids.reshape(num_node_tiles, 1, tile_n)

    num_d_tiles = dim // tile_d  # tile_d divides dim or equals dim
    grid = (num_d_tiles, num_node_tiles)

    # --- VMEM budget (double-buffered x/out/gid blocks + f32 accumulator). ---
    vmem_need = (2 * tile_n * tile_d * itemsize            # x double buffer
                 + 2 * num_graphs * tile_d * out_itemsize  # out double buffer
                 + num_graphs * tile_d * 4                 # f32 accumulator
                 + 2 * tile_n * 4)                         # gid double buffer
    vmem_limit = int(min(max(int(1.5 * vmem_need) + (2 << 20), 32 << 20),
                         vmem_cap))

    cost = pl.CostEstimate(
        flops=2 * num_graphs * padded_nodes * dim,
        transcendentals=0,
        bytes_accessed=(padded_nodes * dim * itemsize
                        + num_graphs * dim * out_itemsize
                        + padded_nodes * 4),
    )

    return pl.pallas_call(
        _make_sum_pool_kernel(num_graphs, tile_n),
        out_shape=jax.ShapeDtypeStruct((num_graphs, dim), x_e.dtype),
        grid_spec=pltpu.PrefetchScalarGridSpec(
            num_scalar_prefetch=0,
            grid=grid,
            in_specs=[
                # Per-node-tile graph ids (tiny DMA, hidden behind the x DMA).
                pl.BlockSpec((1, 1, tile_n), lambda d, n: (n, 0, 0)),
                # Node-feature tile: node rows -> sublanes, features -> lanes.
                pl.BlockSpec((tile_n, tile_d), lambda d, n: (n, d)),
            ],
            out_specs=pl.BlockSpec((num_graphs, tile_d), lambda d, n: (0, d)),
            scratch_shapes=[pltpu.VMEM((num_graphs, tile_d), jnp.float32)],
        ),
        compiler_params=pltpu.CompilerParams(
            dimension_semantics=("parallel", "arbitrary"),
            vmem_limit_bytes=vmem_limit,
        ),
        cost_estimate=cost,
    )(gid3d, x_e)


if __name__ == "__main__":
    key = jax.random.PRNGKey(0)

    # Small shapes consistent with GraphPooling.forward.
    num_nodes, dim, num_graphs = 16, 32, 4
    k_x, k_g, k_e = jax.random.split(key, 3)
    x_e = jax.random.normal(k_x, (num_nodes, dim), dtype=jnp.float32)
    graph_ids = jnp.sort(
        jax.random.randint(k_g, (num_nodes,), 0, num_graphs)).astype(jnp.int32)
    entity_ids = jax.random.randint(k_e, (num_nodes,), 0, 100).astype(jnp.int32)

    out = graph_sum_pooling(x_e, graph_ids, entity_ids, num_graphs=num_graphs)
    out = jax.block_until_ready(out)
    ref = jax.ops.segment_sum(x_e, graph_ids, num_segments=num_graphs)
    assert out.shape == (num_graphs, dim)
    assert jnp.allclose(out, ref, atol=1e-5, rtol=1e-5), "mismatch (small case)"

    # Exercises node padding, multi-tile reduction and the d-split grid axis
    # (explicit tile hints).
    num_nodes2, dim2, num_graphs2 = 1000, 256, 8
    k_x2, k_g2 = jax.random.split(jax.random.PRNGKey(1), 2)
    x2 = jax.random.normal(k_x2, (num_nodes2, dim2), dtype=jnp.float32)
    g2 = jax.random.randint(k_g2, (num_nodes2,), 0, num_graphs2).astype(jnp.int32)
    out2 = graph_sum_pooling(x2, g2, None, num_graphs=num_graphs2,
                             tile_n=256, tile_d=128)
    out2 = jax.block_until_ready(out2)
    ref2 = jax.ops.segment_sum(x2, g2, num_segments=num_graphs2)
    assert out2.shape == (num_graphs2, dim2)
    assert jnp.allclose(out2, ref2, atol=1e-4, rtol=1e-4), "mismatch (tiled case)"

    # Auto-tiled, generation-aware path on the same inputs.
    out3 = graph_sum_pooling(x2, g2, None, num_graphs=num_graphs2)
    out3 = jax.block_until_ready(out3)
    assert jnp.allclose(out3, ref2, atol=1e-4, rtol=1e-4), "mismatch (auto case)"

    print("KERNEL_OK")
</pallas_src>

<mosaic_0001>
module attributes {stable_mosaic.version = 11 : i64} {
  func.func @kernel(%arg0: i32, %arg1: i32, %arg2: memref<1x1x16xi32, #tpu.memory_space<vmem>>, %arg3: memref<16x32xf32, #tpu.memory_space<vmem>>, %arg4: memref<4x32xf32, #tpu.memory_space<vmem>>, %arg5: memref<4x32xf32, #tpu.memory_space<vmem>>) attributes {dimension_semantics = [#tpu.dimension_semantics<parallel>, #tpu.dimension_semantics<arbitrary>], iteration_bounds = array<i64: 1, 1>, scalar_prefetch = 0 : i64, scratch_operands = 1 : i64, tpu.core_type = #tpu.core_type<tc>, window_params = [{transform_indices = @transform_0, window_bounds = array<i64: 1, 1, 16>}, {transform_indices = @transform_1, window_bounds = array<i64: 16, 32>}, {transform_indices = @transform_2, window_bounds = array<i64: 4, 32>}]} {
    %c0_i32 = arith.constant 0 : i32
    %0 = arith.cmpi eq, %arg1, %c0_i32 : i32
    %1 = arith.extui %0 : i1 to i32
    %c0_i32_0 = arith.constant 0 : i32
    %2 = arith.cmpi ne, %1, %c0_i32_0 : i32
    scf.if %2 {
      %cst_11 = arith.constant 0.000000e+00 : f32
      %18 = vector.broadcast %cst_11 : f32 to vector<4x32xf32>
      %c0_12 = arith.constant 0 : index
      %c0_13 = arith.constant 0 : index
      %19 = vector.load %arg5[%c0_12, %c0_13] : memref<4x32xf32, #tpu.memory_space<vmem>>, vector<4x32xf32>
      tpu.vector_store %arg5[%c0_12, %c0_13], %18 {strides = array<i32>} : memref<4x32xf32, #tpu.memory_space<vmem>>, vector<4x32xf32>,
    } else {
    }
    %c0 = arith.constant 0 : index
    %c0_1 = arith.constant 0 : index
    %c0_2 = arith.constant 0 : index
    %3 = vector.load %arg2[%c0, %c0_1, %c0_2] : memref<1x1x16xi32, #tpu.memory_space<vmem>>, vector<1x1x16xi32>
    %4 = vector.shape_cast %3 : vector<1x1x16xi32> to vector<1x16xi32>
    %5 = tpu.iota {dimensions = array<i32: 0>} : vector<4x16xi32>
    %6 = vector.broadcast %4 : vector<1x16xi32> to vector<4x16xi32>
    %7 = arith.cmpi eq, %6, %5 : vector<4x16xi32>
    %8 = arith.extui %7 : vector<4x16xi1> to vector<4x16xi32>
    %9 = arith.sitofp %8 : vector<4x16xi32> to vector<4x16xf32>
    %c0_3 = arith.constant 0 : index
    %c0_4 = arith.constant 0 : index
    %10 = vector.load %arg5[%c0_3, %c0_4] : memref<4x32xf32, #tpu.memory_space<vmem>>, vector<4x32xf32>
    %c0_5 = arith.constant 0 : index
    %c0_6 = arith.constant 0 : index
    %11 = vector.load %arg3[%c0_5, %c0_6] : memref<16x32xf32, #tpu.memory_space<vmem>>, vector<16x32xf32>
    %cst = arith.constant dense<0.000000e+00> : vector<4x32xf32>
    %12 = tpu.matmul %9, %11, %cst {dimension_numbers = #tpu.dot_dimension_numbers<[1], [0], [0], [1], [0, 0, 1, 1], [], []>} : vector<4x16xf32>, vector<16x32xf32>, vector<4x32xf32> -> vector<4x32xf32>
    %13 = arith.addf %10, %12 : vector<4x32xf32>
    %c0_7 = arith.constant 0 : index
    %c0_8 = arith.constant 0 : index
    %14 = vector.load %arg5[%c0_7, %c0_8] : memref<4x32xf32, #tpu.memory_space<vmem>>, vector<4x32xf32>
    tpu.vector_store %arg5[%c0_7, %c0_8], %13 {strides = array<i32>} : memref<4x32xf32, #tpu.memory_space<vmem>>, vector<4x32xf32>,
    %c0_i32_9 = arith.constant 0 : i32
    %15 = arith.cmpi eq, %arg1, %c0_i32_9 : i32
    %16 = arith.extui %15 : i1 to i32
    %c0_i32_10 = arith.constant 0 : i32
    %17 = arith.cmpi ne, %16, %c0_i32_10 : i32
    scf.if %17 {
      %c0_11 = arith.constant 0 : index
      %c0_12 = arith.constant 0 : index
      %18 = vector.load %arg5[%c0_11, %c0_12] : memref<4x32xf32, #tpu.memory_space<vmem>>, vector<4x32xf32>
      %c0_13 = arith.constant 0 : index
      %c0_14 = arith.constant 0 : index
      %19 = vector.load %arg4[%c0_13, %c0_14] : memref<4x32xf32, #tpu.memory_space<vmem>>, vector<4x32xf32>
      tpu.vector_store %arg4[%c0_13, %c0_14], %18 {strides = array<i32>} : memref<4x32xf32, #tpu.memory_space<vmem>>, vector<4x32xf32>,
    } else {
    }
    return
  }
  func.func @transform_0(%arg0: i32, %arg1: i32) -> (i32, i32, i32) {
    %c0_i32 = arith.constant 0 : i32
    %c0_i32_0 = arith.constant 0 : i32
    %c0_i32_1 = arith.constant 0 : i32
    return %arg1, %c0_i32, %c0_i32_0 : i32, i32, i32
  }
  func.func @transform_1(%arg0: i32, %arg1: i32) -> (i32, i32) {
    %c0_i32 = arith.constant 0 : i32
    return %arg1, %arg0 : i32, i32
  }
  func.func @transform_2(%arg0: i32, %arg1: i32) -> (i32, i32) {
    %c0_i32 = arith.constant 0 : i32
    %c0_i32_0 = arith.constant 0 : i32
    return %c0_i32, %arg0 : i32, i32
  }
}

</mosaic_0001>

<bundles_post_ra>
// kernel: tpu_custom_call.1
= control target key start
LH: loop header
LB: loop body
LE: loop exit
PB: predicated region body
PF: predicated region fallthrough
CT: control target
= control target key end

     0   :  { %7 = vsyncpa [#allocation4], 0  ;;  %s320_s0 = inlined_call_operand.hbm [shape: s32[1,1,16], index: 0, kind: input, shape index: {}]   ;;  %s321_s1 = inlined_call_operand.hbm [shape: f32[16,32], index: 1, kind: input, shape index: {}]   ;;  %s322_s2 = inlined_call_operand.hbm [shape: f32[4,32], index: 2, kind: output, shape index: {}]  }
   0x1   :  { %8 = vsyncpa [#allocation7], 0 }
   0x2   :  { %9 = vsyncpa [#allocation5], 0  ;;  %s251_s9 = smov [#allocation3]   ;;  %s252_s11 = smov [#allocation6]  }
   0x3   :  { %s16_s10 = sshll.u32 %s251_s9, 4  ;;  %s25_s12 = sshll.u32 %s252_s11, 4  ;;  %s17_s10 = int_to_ptr.vmem [resolvable:$true] %s16_s10  ;;  %s274_s12 = int_to_ptr.vmem [resolvable:$true] %s25_s12 }
   0x4   :  { %s179_s15 = scalar_lea.hbm %s320_s0, 16 }
   0x5   :  { %p180_p0 = scmp.ne.s32.totalorder %s320_s0, %s179_s15  ;;  %p183_p1 = scmp.lt.u32.totalorder %s179_s15, %s320_s0 }
   0x7   :  { %p185_p2 = pnand %p183_p1, %p180_p0 }
   0x9   :  { %188 = shalt.err (!%p185_p2)
}
   0xa   :  { %s189_s20 = scalar_lea.vmem %s17_s10, 16  ;;  %s193_s21 = scalar_lea.vmem %s17_s10, 32 }
   0xb   :  { %p190_p3 = scmp.ne.s32.totalorder %s17_s10, %s189_s20  ;;  %p194_p4 = scmp.lt.s32.totalorder %s17_s10, %s17_s10 }
   0xc   :  { %p195_p5 = scmp.lt.s32.totalorder %s193_s21, %s189_s20 }
   0xe   :  { %p196_p6 = por %p195_p5, %p194_p4 }
  0x10   :  { %p197_p7 = pnand %p196_p6, %p190_p3 }
  0x12   :  { %200 = shalt.err (!%p197_p7)
}
  0x13   :  { %19 = dma.hbm_to_vmem [thread:$0]  %s320_s0, 16, %s17_s10, [#allocation4]  }
  0x14   :  { %s201_s26 = scalar_lea.hbm %s321_s1, 256 }
  0x15   :  { %p202_p8 = scmp.ne.s32.totalorder %s321_s1, %s201_s26  ;;  %p205_p9 = scmp.lt.u32.totalorder %s201_s26, %s321_s1 }
  0x17   :  { %p207_p10 = pnand %p205_p9, %p202_p8 }
  0x19   :  { %210 = shalt.err (!%p207_p10)
}
  0x1a   :  { %s211_s3 = scalar_lea.vmem %s274_s12, 256  ;;  %p216_p12 = scmp.lt.s32.totalorder %s274_s12, %s274_s12 }
  0x1b   :  { %p212_p11 = scmp.ne.s32.totalorder %s274_s12, %s211_s3  ;;  %p217_p13 = scmp.lt.s32.totalorder %s211_s3, %s211_s3 }
  0x1d   :  { %p218_p0 = por %p217_p13, %p216_p12 }
  0x1f   :  { %p219_p1 = pnand %p218_p0, %p212_p11 }
  0x21   :  { %222 = shalt.err (!%p219_p1)
}
  0x22   :  { %s253_s0 = smov 128   ;;  %s254_s4 = smov 8  }
  0x23   :  { %31 = dma.hbm_to_vmem [thread:$0]  %s321_s1, 256, %s274_s12, [#allocation7], %s253_s0, %s253_s0, %s254_s4  }
  0x24   :  { %245 = dma.done.wait [#allocation4], 16  }
  0x25   :  { %246 = vsyncadd [#allocation4], 4294967280 }
  0x26   :  { %247 = dma.done.wait [#allocation7], 256  }
  0x27   :  { %248 = vsyncadd [#allocation7], 4294967040  ;;  %vm42_vm0 = vcmask 257024   ;;  %v255_v0 = vmov 0.0|0.0   ;;  %v256_v1 = vmov 0.0   ;;  %vm257_vm1 = vmmov 0  }
  0x28   :  { %168 = vmatprep.subr.bf16.mxu0 %v255_v0  ;;  %43 = vst.msk [vmem:[#allocation2] sm:$0xf] %vm42_vm0, %v256_v1  ;;  %165 = vmatprep.mubr.msk.f32.mxu0 %vm257_vm1, %v256_v1  ;;  %v45_v2 = vlaneseq  ;;  %v55_v4 = vld [vmem:[#allocation6] sm:$0xff]  ;;  %v56_v5 = vld [vmem:[#allocation6 + $0x8] sm:$0xff]  ;;  %v155_v6 = vld [vmem:[#allocation3] ss:$0 sm:$0xff] }
  0x29   :  { %v169_v7 = vpack.c.bf16 %v56_v5, %v55_v4  ;;  %vm57_vm3 = vcmask 130048   ;;  %s258_s1 = smov [#allocation8]  }
  0x2a   :  { %v46_v3 = vshrl.u32 %v45_v2, 7  ;;  %s145_s7 = sshll.u32 %s258_s1, 4  ;;  %s146_s7 = int_to_ptr.vmem [resolvable:$true] %s145_s7 }
  0x2b   :  { %170 = vmatpush3.bf16.msra.mxu0 %v169_v7  ;;  %s223_s8 = scalar_lea.vmem %s146_s7, 64  ;;  %p228_p3 = scmp.lt.s32.totalorder %s146_s7, %s146_s7 }
  0x2c   :  { %vm51_vm2 = vcmp.eq.s32.totalorder %v155_v6, %v46_v3  ;;  %p224_p2 = scmp.ne.s32.totalorder %s146_s7, %s223_s8  ;;  %p229_p4 = scmp.lt.s32.totalorder %s223_s8, %s223_s8 }
  0x2d   :  { %v156_v8 = vsel %vm51_vm2, 1.0, %v256_v1 }
  0x2e   :  { %166 = vmatmul.mubr.msk.f32.vlgmr.msra.gmra.mrb[0].mxu0 %vm57_vm3, %v156_v8  ;;  %p230_p5 = por %p229_p4, %p228_p3 }
  0x2f   :  { %v54_v9 = vld [vmem:[#allocation2] sm:$0xf] }
  0x30   :  { %p231_p6 = pnand %p230_p5, %p224_p2 }
 0x101   :  { %v127_v10 = vpop.f32.mrb[0].mxu0 }
 0x102   :  { %v131_v11 = vadd.f32 %v127_v10, %v54_v9  ;;  %v167_v12 = vpop.f32.mrb[1].mxu0 }
 0x104   :  { %133 = vst.msk [vmem:[#allocation2] sm:$0xf] %vm42_vm0, %v131_v11 }
 0x10b   :  { %v137_v13 = vld [vmem:[#allocation2] sm:$0xf] }
 0x10c   :  { %138 = vst.msk [vmem:[#allocation8] sm:$0xf] %vm42_vm0, %v137_v13 }
 0x10d   :  { %234 = shalt.err (!%p231_p6)
}
 0x10e   :  { %s235_s11 = scalar_lea.hbm %s322_s2, 64 }
 0x10f   :  { %p236_p7 = scmp.ne.s32.totalorder %s322_s2, %s235_s11  ;;  %p239_p8 = scmp.lt.u32.totalorder %s235_s11, %s322_s2 }
 0x111   :  { %p241_p9 = pnand %p239_p8, %p236_p7 }
 0x113   :  { %244 = shalt.err (!%p241_p9)
}
 0x114   :  { %148 = dma.vmem_to_hbm [thread:$0]  %s146_s7, 64, %s322_s2, [#allocation5]  }
 0x115   :  { %249 = dma.done.wait [#allocation5], 64  }
 0x116   :  { %250 = vsyncadd [#allocation5], 4294967232 }
 0x117   :  { %152 = vsyncpa [#allocation4], 1 }
 0x118   :  { %153 = vsyncpa [#allocation7], 1 }
 0x119   :  { %154 = vsyncpa [#allocation5], 1 }

</bundles_post_ra>
